<compile_context>
chip_gen: v6e
topology: v6e:2x2x1
jax: 0.10.0
libtpu: 0.0.40
codegen_flags: <defaults>
</compile_context>

<pallas_src>
import math

import jax
import jax.numpy as jnp
from jax.experimental import pallas as pl
from jax.experimental.pallas import tpu as pltpu


def _add_bias_kernel(x_ref, b_ref, o_ref):
    # x: (tm, tn), b: (1, tn) -> broadcast add over rows.  Pure VPU work;
    # the kernel is HBM-bandwidth bound.
    o_ref[...] = x_ref[...] + b_ref[...]


def _tile_budget_bytes() -> int:
    """Per-tile byte budget, gated per TPU generation."""
    kind = ""
    try:
        kind = jax.devices()[0].device_kind.lower()
    except Exception:
        pass
    # v5e (and older): ~820 GB/s HBM -> a 2 MiB tile already costs ~5 us of
    # DMA, so step overhead is <10% and we stay inside the 16 MiB default
    # scoped VMEM without any flag.  v6e/v7x: faster HBM makes the fixed
    # ~0.35 us/step overhead dominant, so use ~4 MiB tiles.
    if ("v5" in kind) or ("v4" in kind) or ("v3" in kind) or ("v2" in kind):
        return 2 << 20
    return 4 << 20


def _row_tile(n_rows: int, tn: int, itemsize: int, budget_bytes: int) -> int:
    """Row-tile size: multiple of the dtype's sublane packing, <= budget."""
    pack = 8 * max(1, 4 // max(1, itemsize))  # 8 f32, 16 bf16/f16, 32 int8/fp8
    rows_fit = max(1, budget_bytes // max(1, tn * itemsize))
    if rows_fit >= n_rows:
        return n_rows                          # full extent: always legal
    tm = rows_fit - (rows_fit % pack)
    if tm < pack:
        tm = pack
    return min(tm, n_rows)


def _col_tile(F: int) -> int:
    """Column-tile size: whole F if small, else a 128-multiple cap (2048)."""
    if F <= 2048:
        return F
    return 2048


def _add_bias_single(x2: jax.Array, bias_row: jax.Array) -> jax.Array:
    """Whole-array single-block call (small inputs / fold remainders)."""
    return pl.pallas_call(
        _add_bias_kernel,
        out_shape=jax.ShapeDtypeStruct(x2.shape, x2.dtype),
    )(x2, bias_row)


def _add_bias_tiled(x2: jax.Array, bias_row: jax.Array) -> jax.Array:
    """Row+column tiled, pipelined path.  x2: (N, F), bias_row: (1, F)."""
    N, F = x2.shape
    itemsize = x2.dtype.itemsize
    budget = _tile_budget_bytes()
    tn = _col_tile(F)
    tm = _row_tile(N, tn, itemsize, budget)
    grid = (pl.cdiv(N, tm), pl.cdiv(F, tn))
    return pl.pallas_call(
        _add_bias_kernel,
        out_shape=jax.ShapeDtypeStruct((N, F), x2.dtype),
        grid=grid,
        in_specs=[
            pl.BlockSpec((tm, tn), lambda i, j: (i, j)),
            # Bias only depends on the column block -> no re-DMA across rows.
            pl.BlockSpec((1, tn), lambda i, j: (0, j)),
        ],
        out_specs=pl.BlockSpec((tm, tn), lambda i, j: (i, j)),
        compiler_params=pltpu.CompilerParams(
            # Both axes independent -> shard across v7x's 2 TensorCores.
            dimension_semantics=("parallel", "parallel"),
            # 2 x-bufs + 2 out-bufs + bias stays well under this; 48 MiB is
            # below every generation's physical VMEM (64 MiB on v7x).
            vmem_limit_bytes=48 << 20,
        ),
    )(x2, bias_row)


def _add_bias_2d(x2: jax.Array, bias_row: jax.Array) -> jax.Array:
    """Dispatch: lane-fold narrow / misaligned F, then run the tiled kernel."""
    N, F = x2.shape

    if F % 128 == 0:
        return _add_bias_tiled(x2, bias_row)

    # F is lane-sparse (e.g. F = 4): fold k rows into the lane axis so the
    # folded last dim k*F is a multiple of 128 (lane-dense, unmasked stores).
    k = 128 // math.gcd(F, 128)
    n_main = (N // k) * k
    if n_main == 0:
        return _add_bias_single(x2, bias_row)

    x_main = x2[:n_main].reshape(n_main // k, k * F)   # row-major, contiguous
    b_main = jnp.tile(bias_row, (1, k))                # (1, k*F)
    out_main = _add_bias_tiled(x_main, b_main).reshape(n_main, F)
    if n_main == N:
        return out_main

    # Remainder (< k rows): tiny single-block call.
    out_rem = _add_bias_single(x2[n_main:], bias_row)
    return jnp.concatenate([out_main, out_rem], axis=0)


def add_bias(x: jax.Array, bias: jax.Array) -> jax.Array:
    """Pallas equivalent of AddBias.forward.  `bias` has shape (D, 1)."""
    assert x.ndim in (2, 4)
    D = bias.shape[0]

    if x.ndim == 2:
        N, F = x.shape
        assert F == D
        bias_row = bias.reshape(1, D).astype(x.dtype)   # == bias.t().view(1, -1)
        return _add_bias_2d(x, bias_row)

    # 4D NCHW: flatten to (N, C*H*W) and expand the per-channel bias into one
    # (1, C*H*W) row (bias[c] repeated H*W times) so the same lane-dense 2D
    # kernel applies regardless of small C.
    N, C, H, W = x.shape
    assert C == D
    F = C * H * W
    x_flat = x.reshape(N, F)
    bias_row = jnp.broadcast_to(
        bias.reshape(C, 1).astype(x.dtype), (C, H * W)
    ).reshape(1, F)
    out = _add_bias_2d(x_flat, bias_row)
    return out.reshape(N, C, H, W)


if __name__ == "__main__":
    key = jax.random.PRNGKey(0)
    k_bias, k_x2, k_x4, k_big = jax.random.split(key, 4)

    D = 4  # bias / channel dimension
    bias_vec = jax.random.normal(k_bias, (D,), dtype=jnp.float32)
    bias_param = bias_vec[:, None]  # module stores bias.unsqueeze(1) -> (D, 1)

    # 2D input case: (N, D) -- small, exercises the single-block path.
    x2 = jax.random.normal(k_x2, (2, D), dtype=jnp.float32)
    out2 = jax.block_until_ready(add_bias(x2, bias_param))
    assert out2.shape == x2.shape and out2.dtype == x2.dtype
    assert jnp.allclose(out2, x2 + bias_vec[None, :], atol=1e-6), "2D mismatch"

    # 4D input case NCHW: (N, C, H, W) -- lane-dense F = C*H*W = 1024, tiled path.
    x4 = jax.random.normal(k_x4, (2, D, 16, 16), dtype=jnp.float32)
    out4 = jax.block_until_ready(add_bias(x4, bias_param))
    assert out4.shape == x4.shape and out4.dtype == x4.dtype
    assert jnp.allclose(out4, x4 + bias_vec[None, :, None, None], atol=1e-6), "4D mismatch"

    # Larger 2D with narrow F: exercises row->lane folding (k = 32) and the
    # remainder path (4100 % 32 != 0).
    x2_big = jax.random.normal(k_big, (4100, D), dtype=jnp.float32)
    out_big = jax.block_until_ready(add_bias(x2_big, bias_param))
    assert jnp.allclose(out_big, x2_big + bias_vec[None, :], atol=1e-6), "big 2D mismatch"

    print("KERNEL_OK")
</pallas_src>

<mosaic_0001>
module attributes {stable_mosaic.version = 11 : i64} {
  func.func @_add_bias_kernel(%arg0: memref<2x4xf32, #tpu.memory_space<vmem>>, %arg1: memref<1x4xf32, #tpu.memory_space<vmem>>, %arg2: memref<2x4xf32, #tpu.memory_space<vmem>>) attributes {dimension_semantics = [], scalar_prefetch = 0 : i64, scratch_operands = 0 : i64, tpu.core_type = #tpu.core_type<tc>} {
    %c0 = arith.constant 0 : index
    %c0_0 = arith.constant 0 : index
    %0 = vector.load %arg0[%c0, %c0_0] : memref<2x4xf32, #tpu.memory_space<vmem>>, vector<2x4xf32>
    %c0_1 = arith.constant 0 : index
    %c0_2 = arith.constant 0 : index
    %1 = vector.load %arg1[%c0_1, %c0_2] : memref<1x4xf32, #tpu.memory_space<vmem>>, vector<1x4xf32>
    %2 = vector.broadcast %1 : vector<1x4xf32> to vector<2x4xf32>
    %3 = arith.addf %0, %2 : vector<2x4xf32>
    %c0_3 = arith.constant 0 : index
    %c0_4 = arith.constant 0 : index
    %4 = vector.load %arg2[%c0_3, %c0_4] : memref<2x4xf32, #tpu.memory_space<vmem>>, vector<2x4xf32>
    tpu.vector_store %arg2[%c0_3, %c0_4], %3 {strides = array<i32>} : memref<2x4xf32, #tpu.memory_space<vmem>>, vector<2x4xf32>,
    return
  }
}

</mosaic_0001>

<bundles_post_ra>
// kernel: tpu_custom_call.1
= control target key start
LH: loop header
LB: loop body
LE: loop exit
PB: predicated region body
PF: predicated region fallthrough
CT: control target
= control target key end

     0   :  { %7 = vsyncpa [#allocation3], 0  ;;  %s123_s0 = inlined_call_operand.hbm [shape: f32[2,4], index: 0, kind: input, shape index: {}]   ;;  %s124_s1 = inlined_call_operand.vmem [shape: f32[1,4], index: 1, kind: input, shape index: {}]   ;;  %s125_s2 = inlined_call_operand.hbm [shape: f32[2,4], index: 2, kind: output, shape index: {}]  }
   0x1   :  { %8 = vsyncpa [#allocation4], 0  ;;  %s97_s9 = smov [#allocation2]  }
   0x2   :  { %s15_s10 = sshll.u32 %s97_s9, 4  ;;  %s16_s10 = int_to_ptr.vmem [resolvable:$true] %s15_s10 }
   0x3   :  { %s61_s11 = scalar_lea.vmem %s16_s10, 32  ;;  %p66_p1 = scmp.lt.s32.totalorder %s16_s10, %s16_s10 }
   0x4   :  { %p62_p0 = scmp.ne.s32.totalorder %s16_s10, %s61_s11  ;;  %p67_p2 = scmp.lt.s32.totalorder %s61_s11, %s61_s11 }
   0x6   :  { %p68_p3 = por %p67_p2, %p66_p1 }
   0x8   :  { %p69_p4 = pnand %p68_p3, %p62_p0 }
   0xa   :  { %72 = shalt.err (!%p69_p4)
}
   0xb   :  { %18 = dma.hbm_to_vmem [thread:$0]  %s123_s0, 32, %s16_s10, [#allocation3]  }
   0xc   :  { %93 = dma.done.wait [#allocation3], 32  }
   0xd   :  { %94 = vsyncadd [#allocation3], 4294967264  ;;  %s98_s14 = smov [#allocation5]   ;;  %v24_v0 = vld [vmem:[#allocation2] sm:$0x3]  ;;  %vm33_vm0 = vcmask 25600  }
   0xe   :  { %s41_s15 = sshll.u32 %s98_s14, 4  ;;  %v50_v1 = vld [vmem:[%s124_s1] ss:$0 sm:$0xff]  ;;  %s42_s15 = int_to_ptr.vmem [resolvable:$true] %s41_s15 }
   0xf   :  { %v32_v2 = vadd.f32 %v50_v1, %v24_v0  ;;  %s73_s18 = scalar_lea.vmem %s42_s15, 32  ;;  %p78_p6 = scmp.lt.s32.totalorder %s42_s15, %s42_s15 }
  0x10   :  { %p74_p5 = scmp.ne.s32.totalorder %s42_s15, %s73_s18  ;;  %p79_p7 = scmp.lt.s32.totalorder %s73_s18, %s73_s18 }
  0x11   :  { %34 = vst.msk [vmem:[#allocation5] sm:$0x3] %vm33_vm0, %v32_v2 }
  0x12   :  { %p80_p8 = por %p79_p7, %p78_p6 }
  0x14   :  { %p81_p9 = pnand %p80_p8, %p74_p5 }
  0x16   :  { %84 = shalt.err (!%p81_p9)
}
  0x17   :  { %44 = dma.vmem_to_hbm [thread:$0]  %s42_s15, 32, %s125_s2, [#allocation4]  }
  0x18   :  { %95 = dma.done.wait [#allocation4], 32  }
  0x19   :  { %96 = vsyncadd [#allocation4], 4294967264 }
  0x1a   :  { %48 = vsyncpa [#allocation3], 1 }
  0x1b   :  { %49 = vsyncpa [#allocation4], 1 }

</bundles_post_ra>
